<compile_context>
chip_gen: v7x
topology: tpu7x:2x2x1
jax: 0.10.0
libtpu: 0.0.40
codegen_flags: <defaults>
</compile_context>

<pallas_src>
import jax
import jax.numpy as jnp
from jax.experimental import pallas as pl
from jax.experimental.pallas import tpu as pltpu


# ----------------------------------------------------------------------------
# Kernel
# ----------------------------------------------------------------------------
def _text_fc_kernel(x_ref, w1_ref, b1_ref, w2_ref, b2_ref, o_ref, acc_ref):
    """One (row-tile, hidden-tile) step of y = relu(x@W1 + b1) @ W2 + b2.

    x_ref:  (TM, H)   bf16   -- row tile of the flattened (B*S, H) activations
    w1_ref: (H, TH)   bf16   -- hidden-tile slice of W1
    b1_ref: (1, TH)   f32
    w2_ref: (TH, O)   bf16   -- matching slice of W2
    b2_ref: (1, O)    f32
    o_ref:  (TM, O)   f32    -- resident across the hidden (reduction) axis
    acc_ref:(TM, O)   f32    -- VMEM scratch accumulator
    """
    k = pl.program_id(1)

    @pl.when(k == 0)
    def _():
        acc_ref[...] = jnp.zeros_like(acc_ref)

    # First linear (full-H contraction against this hidden tile of W1),
    # bias + ReLU in f32.  ReLU is elementwise, so tiling the intermediate
    # hidden dim commutes with the second contraction.
    h = jnp.dot(x_ref[...], w1_ref[...], preferred_element_type=jnp.float32)
    h = jnp.maximum(h + b1_ref[...], 0.0)

    # Second linear: partial contraction over this hidden tile, accumulate f32.
    acc_ref[...] += jnp.dot(
        h.astype(jnp.bfloat16), w2_ref[...], preferred_element_type=jnp.float32
    )

    @pl.when(k == pl.num_programs(1) - 1)
    def _():
        # b2 added once at the epilogue; Dropout(0.0) and stack/sum are identity.
        o_ref[...] = (acc_ref[...] + b2_ref[...]).astype(o_ref.dtype)


# ----------------------------------------------------------------------------
# Wrapper
# ----------------------------------------------------------------------------
def _round_up(x, m):
    return ((x + m - 1) // m) * m


def _pick_hidden_tile(h, target=512, align=128):
    """Largest multiple of `align` that divides h and is <= target, else h."""
    if h <= target or h % align != 0:
        return h
    t = (target // align) * align
    while t >= align:
        if h % t == 0:
            return t
        t -= align
    return h


def text_hidden_fcs_pallas(hidden_states, w1, b1, w2, b2,
                           *, row_tile=256, hidden_tile_target=512):
    """ChatterBox text_hidden_fcs head: relu(x@W1+b1)@W2+b2, via Pallas.

    hidden_states: (B, S, H) float32
    returns:       (B, S, O) float32
    """
    B, S, H = hidden_states.shape
    O = w2.shape[1]
    rows = B * S

    # Row tiling (parallel grid axis).
    TM = row_tile if rows >= row_tile else _round_up(rows, 8)
    padded_rows = _round_up(rows, TM)

    # Intermediate-hidden tiling (reduction grid axis for the 2nd matmul).
    TH = _pick_hidden_tile(H, target=hidden_tile_target)

    x = hidden_states.reshape(rows, H)
    if padded_rows != rows:
        x = jnp.pad(x, ((0, padded_rows - rows), (0, 0)))

    # bf16 MXU inputs, f32 biases / accumulation.
    x_bf = x.astype(jnp.bfloat16)
    w1_bf = w1.astype(jnp.bfloat16)
    w2_bf = w2.astype(jnp.bfloat16)
    b1_f32 = b1.reshape(1, H).astype(jnp.float32)
    b2_f32 = b2.reshape(1, O).astype(jnp.float32)

    grid = (padded_rows // TM, H // TH)

    cost = pl.CostEstimate(
        flops=2 * rows * H * (H + O),
        transcendentals=0,
        bytes_accessed=(x_bf.size * 2 + w1_bf.size * 2 + w2_bf.size * 2
                        + b1_f32.size * 4 + b2_f32.size * 4
                        + padded_rows * O * 4),
    )

    # Approximate per-step VMEM (double-buffered inputs/outputs + accumulator).
    tile_bytes = 2 * (TM * H * 2 + H * TH * 2 + TH * 4
                      + TH * O * 2 + O * 4 + TM * O * 4) + TM * O * 4
    vmem_limit = int(min(max(2 * tile_bytes, 4 << 20), 64 << 20))

    out = pl.pallas_call(
        _text_fc_kernel,
        out_shape=jax.ShapeDtypeStruct((padded_rows, O), jnp.float32),
        grid_spec=pltpu.PrefetchScalarGridSpec(
            num_scalar_prefetch=0,
            grid=grid,
            in_specs=[
                pl.BlockSpec((TM, H), lambda i, k: (i, 0)),   # x row tile
                pl.BlockSpec((H, TH), lambda i, k: (0, k)),   # W1 hidden slice
                pl.BlockSpec((1, TH), lambda i, k: (0, k)),   # b1 slice
                pl.BlockSpec((TH, O), lambda i, k: (k, 0)),   # W2 slice
                pl.BlockSpec((1, O), lambda i, k: (0, 0)),    # b2 (resident)
            ],
            out_specs=pl.BlockSpec((TM, O), lambda i, k: (i, 0)),
            scratch_shapes=[pltpu.VMEM((TM, O), jnp.float32)],
        ),
        compiler_params=pltpu.CompilerParams(
            dimension_semantics=("parallel", "arbitrary"),
            vmem_limit_bytes=vmem_limit,
        ),
        cost_estimate=cost,
    )(x_bf, w1_bf, b1_f32, w2_bf, b2_f32)

    return out[:rows].reshape(B, S, O)


# ----------------------------------------------------------------------------
# ChatterBox text-head forward semantics (mask + head + vg-token gather)
# ----------------------------------------------------------------------------
def chatterbox_text_head_forward(input_ids, last_llm_hidden, vg_token_idx,
                                 params, max_vg_tokens=None):
    """Reproduces the ChatterBox.forward() text-head semantics.

    input_ids:       (B, S) int32
    last_llm_hidden: (B, S, H) float32   -- stands in for output_hidden_states[-1]
    returns: (vg_token_mask (B,S) bool,
              last_hidden_state (B,S,O),
              pred_embeddings_padded (MAX_VG, O),
              n_vg (scalar int) -- number of valid rows in the padded gather)
    """
    B, S = input_ids.shape
    O = params["w2"].shape[1]

    # vg_token_mask = (input_ids[:, 1:] == vg_token_idx) ++ zeros column
    vg_token_mask = jnp.concatenate(
        [input_ids[:, 1:] == vg_token_idx, jnp.zeros((B, 1), dtype=bool)], axis=1
    )

    last_hidden_state = text_hidden_fcs_pallas(
        last_llm_hidden,
        params["w1"], params["b1"], params["w2"], params["b2"],
    )

    # pred_embeddings = last_hidden_state[vg_token_mask], implemented as a
    # jit-friendly fixed-size nonzero + gather (data-independent shapes).
    flat_mask = vg_token_mask.reshape(-1)
    if max_vg_tokens is None:
        max_vg_tokens = int(flat_mask.shape[0])
    idx = jnp.nonzero(flat_mask, size=max_vg_tokens, fill_value=0)[0]
    pred_padded = jnp.take(last_hidden_state.reshape(-1, O), idx, axis=0)
    n_vg = flat_mask.sum()
    return vg_token_mask, last_hidden_state, pred_padded, n_vg


def _reference_text_head(last_llm_hidden, params):
    x = last_llm_hidden
    h = jnp.einsum("bsh,hk->bsk", x, params["w1"]) + params["b1"]
    h = jnp.maximum(h, 0.0)
    y = jnp.einsum("bsk,ko->bso", h, params["w2"]) + params["b2"]
    return y


if __name__ == "__main__":
    key = jax.random.PRNGKey(0)
    k_x, k_ids, k_w1, k_b1, k_w2, k_b2 = jax.random.split(key, 6)

    # Small shapes consistent with the module: in_dim = LLM hidden size,
    # out_dim = 256 (kept lane-aligned).
    B, S, H, OUT = 2, 8, 32, 256
    VG_TOKEN_IDX = 7

    last_llm_hidden = jax.random.normal(k_x, (B, S, H), dtype=jnp.float32)
    input_ids = jax.random.randint(k_ids, (B, S), 0, 10, dtype=jnp.int32)
    # Guarantee at least one <vg> token so the gather path is exercised.
    input_ids = input_ids.at[0, 3].set(VG_TOKEN_IDX)
    input_ids = input_ids.at[1, 5].set(VG_TOKEN_IDX)

    params = {
        "w1": jax.random.normal(k_w1, (H, H), dtype=jnp.float32) * 0.05,
        "b1": jax.random.normal(k_b1, (H,), dtype=jnp.float32) * 0.01,
        "w2": jax.random.normal(k_w2, (H, OUT), dtype=jnp.float32) * 0.05,
        "b2": jax.random.normal(k_b2, (OUT,), dtype=jnp.float32) * 0.01,
    }

    vg_mask, last_hidden, pred_padded, n_vg = chatterbox_text_head_forward(
        input_ids, last_llm_hidden, VG_TOKEN_IDX, params
    )
    jax.block_until_ready(last_hidden)
    jax.block_until_ready(pred_padded)

    # Correctness check against a pure-JAX f32 reference (kernel uses bf16
    # MXU inputs with f32 accumulation -> loose tolerance).
    ref = _reference_text_head(last_llm_hidden, params)
    assert last_hidden.shape == (B, S, OUT)
    assert jnp.allclose(last_hidden, ref, atol=2e-2, rtol=2e-2)

    # Mask semantics: shifted-by-one match then trailing zeros column.
    ref_mask = jnp.concatenate(
        [input_ids[:, 1:] == VG_TOKEN_IDX, jnp.zeros((B, 1), dtype=bool)], axis=1
    )
    assert bool(jnp.all(vg_mask == ref_mask))

    # pred_embeddings semantics: first n_vg rows of the padded gather equal the
    # boolean-mask selection of the reference output.
    n = int(n_vg)
    pred_emb = pred_padded[:n]
    ref_pred = ref[ref_mask]
    assert pred_emb.shape == (int(ref_mask.sum()), OUT)
    assert jnp.allclose(pred_emb, ref_pred, atol=2e-2, rtol=2e-2)

    print("KERNEL_OK")
</pallas_src>

<mosaic_0001>
module attributes {stable_mosaic.version = 11 : i64} {
  func.func @_text_fc_kernel(%arg0: i32, %arg1: i32, %arg2: memref<16x32xbf16, #tpu.memory_space<vmem>>, %arg3: memref<32x32xbf16, #tpu.memory_space<vmem>>, %arg4: memref<1x32xf32, #tpu.memory_space<vmem>>, %arg5: memref<32x256xbf16, #tpu.memory_space<vmem>>, %arg6: memref<1x256xf32, #tpu.memory_space<vmem>>, %arg7: memref<16x256xf32, #tpu.memory_space<vmem>>, %arg8: memref<16x256xf32, #tpu.memory_space<vmem>>) attributes {dimension_semantics = [#tpu.dimension_semantics<parallel>, #tpu.dimension_semantics<arbitrary>], iteration_bounds = array<i64: 1, 1>, scalar_prefetch = 0 : i64, scratch_operands = 1 : i64, tpu.core_type = #tpu.core_type<tc>, window_params = [{transform_indices = @transform_0, window_bounds = array<i64: 16, 32>}, {transform_indices = @transform_1, window_bounds = array<i64: 32, 32>}, {transform_indices = @transform_2, window_bounds = array<i64: 1, 32>}, {transform_indices = @transform_3, window_bounds = array<i64: 32, 256>}, {pipeline_mode = #tpu.pipeline_mode<synchronous>, transform_indices = @transform_4, window_bounds = array<i64: 1, 256>}, {transform_indices = @transform_5, window_bounds = array<i64: 16, 256>}]} {
    %c0_i32 = arith.constant 0 : i32
    %0 = arith.cmpi eq, %arg1, %c0_i32 : i32
    %1 = arith.extui %0 : i1 to i32
    %c0_i32_0 = arith.constant 0 : i32
    %2 = arith.cmpi ne, %1, %c0_i32_0 : i32
    scf.if %2 {
      %cst_16 = arith.constant 0.000000e+00 : f32
      %20 = vector.broadcast %cst_16 : f32 to vector<16x256xf32>
      %c0_17 = arith.constant 0 : index
      %c0_18 = arith.constant 0 : index
      %21 = vector.load %arg8[%c0_17, %c0_18] : memref<16x256xf32, #tpu.memory_space<vmem>>, vector<16x256xf32>
      tpu.vector_store %arg8[%c0_17, %c0_18], %20 {strides = array<i32>} : memref<16x256xf32, #tpu.memory_space<vmem>>, vector<16x256xf32>,
    } else {
    }
    %c0 = arith.constant 0 : index
    %c0_1 = arith.constant 0 : index
    %3 = vector.load %arg2[%c0, %c0_1] : memref<16x32xbf16, #tpu.memory_space<vmem>>, vector<16x32xbf16>
    %c0_2 = arith.constant 0 : index
    %c0_3 = arith.constant 0 : index
    %4 = vector.load %arg3[%c0_2, %c0_3] : memref<32x32xbf16, #tpu.memory_space<vmem>>, vector<32x32xbf16>
    %cst = arith.constant dense<0.000000e+00> : vector<16x32xf32>
    %5 = tpu.matmul %3, %4, %cst {dimension_numbers = #tpu.dot_dimension_numbers<[1], [0], [0], [1], [0, 0, 1, 1], [], []>} : vector<16x32xbf16>, vector<32x32xbf16>, vector<16x32xf32> -> vector<16x32xf32>
    %c0_4 = arith.constant 0 : index
    %c0_5 = arith.constant 0 : index
    %6 = vector.load %arg4[%c0_4, %c0_5] : memref<1x32xf32, #tpu.memory_space<vmem>>, vector<1x32xf32>
    %7 = vector.broadcast %6 : vector<1x32xf32> to vector<16x32xf32>
    %8 = arith.addf %5, %7 : vector<16x32xf32>
    %cst_6 = arith.constant 0.000000e+00 : f32
    %9 = vector.broadcast %cst_6 : f32 to vector<16x32xf32>
    %10 = arith.maximumf %8, %9 : vector<16x32xf32>
    %c0_7 = arith.constant 0 : index
    %c0_8 = arith.constant 0 : index
    %11 = vector.load %arg8[%c0_7, %c0_8] : memref<16x256xf32, #tpu.memory_space<vmem>>, vector<16x256xf32>
    %12 = arith.truncf %10 : vector<16x32xf32> to vector<16x32xbf16>
    %c0_9 = arith.constant 0 : index
    %c0_10 = arith.constant 0 : index
    %13 = vector.load %arg5[%c0_9, %c0_10] : memref<32x256xbf16, #tpu.memory_space<vmem>>, vector<32x256xbf16>
    %cst_11 = arith.constant dense<0.000000e+00> : vector<16x256xf32>
    %14 = tpu.matmul %12, %13, %cst_11 {dimension_numbers = #tpu.dot_dimension_numbers<[1], [0], [0], [1], [0, 0, 1, 1], [], []>} : vector<16x32xbf16>, vector<32x256xbf16>, vector<16x256xf32> -> vector<16x256xf32>
    %15 = arith.addf %11, %14 : vector<16x256xf32>
    %c0_12 = arith.constant 0 : index
    %c0_13 = arith.constant 0 : index
    %16 = vector.load %arg8[%c0_12, %c0_13] : memref<16x256xf32, #tpu.memory_space<vmem>>, vector<16x256xf32>
    tpu.vector_store %arg8[%c0_12, %c0_13], %15 {strides = array<i32>} : memref<16x256xf32, #tpu.memory_space<vmem>>, vector<16x256xf32>,
    %c0_i32_14 = arith.constant 0 : i32
    %17 = arith.cmpi eq, %arg1, %c0_i32_14 : i32
    %18 = arith.extui %17 : i1 to i32
    %c0_i32_15 = arith.constant 0 : i32
    %19 = arith.cmpi ne, %18, %c0_i32_15 : i32
    scf.if %19 {
      %c0_16 = arith.constant 0 : index
      %c0_17 = arith.constant 0 : index
      %20 = vector.load %arg8[%c0_16, %c0_17] : memref<16x256xf32, #tpu.memory_space<vmem>>, vector<16x256xf32>
      %c0_18 = arith.constant 0 : index
      %c0_19 = arith.constant 0 : index
      %21 = vector.load %arg6[%c0_18, %c0_19] : memref<1x256xf32, #tpu.memory_space<vmem>>, vector<1x256xf32>
      %22 = vector.broadcast %21 : vector<1x256xf32> to vector<16x256xf32>
      %23 = arith.addf %20, %22 : vector<16x256xf32>
      %c0_20 = arith.constant 0 : index
      %c0_21 = arith.constant 0 : index
      %24 = vector.load %arg7[%c0_20, %c0_21] : memref<16x256xf32, #tpu.memory_space<vmem>>, vector<16x256xf32>
      tpu.vector_store %arg7[%c0_20, %c0_21], %23 {strides = array<i32>} : memref<16x256xf32, #tpu.memory_space<vmem>>, vector<16x256xf32>,
    } else {
    }
    return
  }
  func.func @transform_0(%arg0: i32, %arg1: i32) -> (i32, i32) {
    %c0_i32 = arith.constant 0 : i32
    %c0_i32_0 = arith.constant 0 : i32
    return %arg0, %c0_i32 : i32, i32
  }
  func.func @transform_1(%arg0: i32, %arg1: i32) -> (i32, i32) {
    %c0_i32 = arith.constant 0 : i32
    %c0_i32_0 = arith.constant 0 : i32
    return %c0_i32, %arg1 : i32, i32
  }
  func.func @transform_2(%arg0: i32, %arg1: i32) -> (i32, i32) {
    %c0_i32 = arith.constant 0 : i32
    %c0_i32_0 = arith.constant 0 : i32
    return %c0_i32, %arg1 : i32, i32
  }
  func.func @transform_3(%arg0: i32, %arg1: i32) -> (i32, i32) {
    %c0_i32 = arith.constant 0 : i32
    %c0_i32_0 = arith.constant 0 : i32
    return %arg1, %c0_i32 : i32, i32
  }
  func.func @transform_4(%arg0: i32, %arg1: i32) -> (i32, i32) {
    %c0_i32 = arith.constant 0 : i32
    %c0_i32_0 = arith.constant 0 : i32
    %c0_i32_1 = arith.constant 0 : i32
    return %c0_i32, %c0_i32_0 : i32, i32
  }
  func.func @transform_5(%arg0: i32, %arg1: i32) -> (i32, i32) {
    %c0_i32 = arith.constant 0 : i32
    %c0_i32_0 = arith.constant 0 : i32
    return %arg0, %c0_i32 : i32, i32
  }
}

</mosaic_0001>

<bundles_post_ra>
// kernel: tpu_custom_call.1
= control target key start
LH: loop header
LB: loop body
LE: loop exit
PB: predicated region body
PF: predicated region fallthrough
CT: control target
= control target key end

     0   :  { %10 = vsyncpa [#allocation4], 0  ;;  %s519_s0 = inlined_call_operand.hbm [shape: bf16[16,32], index: 0, kind: input, shape index: {}]   ;;  %s520_s1 = inlined_call_operand.hbm [shape: bf16[32,32], index: 1, kind: input, shape index: {}]   ;;  %s521_s2 = inlined_call_operand.vmem [shape: f32[1,32], index: 2, kind: input, shape index: {}]   ;;  %s522_s3 = inlined_call_operand.hbm [shape: bf16[32,256], index: 3, kind: input, shape index: {}]   ;;  %s523_s4 = inlined_call_operand.vmem [shape: f32[1,256], index: 4, kind: input, shape index: {}]   ;;  %s524_s5 = inlined_call_operand.hbm [shape: f32[16,256], index: 5, kind: output, shape index: {}]  }
   0x1   :  { %11 = vsyncpa [#allocation7], 0 }
   0x2   :  { %12 = vsyncpa [#allocation5], 0  ;;  %s413_s18 = smov [#allocation6]   ;;  %s414_s20 = smov [#allocation3]  }
   0x3   :  { %s30_s19 = sshll.u32 %s413_s18, 4  ;;  %s18_s21 = sshll.u32 %s414_s20, 4  ;;  %s31_s19 = int_to_ptr.vmem [resolvable:$true] %s30_s19  ;;  %s456_s21 = int_to_ptr.vmem [resolvable:$true] %s18_s21 }
   0x4   :  { %s319_s24 = scalar_lea.hbm %s520_s1, 256 }
   0x5   :  { %p320_p0 = scmp.ne.s32.totalorder %s520_s1, %s319_s24  ;;  %p323_p1 = scmp.lt.u32.totalorder %s319_s24, %s520_s1 }
   0x7   :  { %p325_p2 = pnand %p323_p1, %p320_p0 }
   0x9   :  { %328 = shalt.err (!%p325_p2)
}
   0xa   :  { %s329_s29 = scalar_lea.vmem %s31_s19, 256  ;;  %p334_p4 = scmp.lt.s32.totalorder %s31_s19, %s31_s19 }
   0xb   :  { %p330_p3 = scmp.ne.s32.totalorder %s31_s19, %s329_s29  ;;  %p335_p5 = scmp.lt.s32.totalorder %s329_s29, %s329_s29 }
   0xd   :  { %p336_p6 = por %p335_p5, %p334_p4 }
   0xf   :  { %p337_p7 = pnand %p336_p6, %p330_p3 }
  0x11   :  { %340 = shalt.err (!%p337_p7)
}
  0x12   :  { %s415_s30 = smov 64   ;;  %s416_s6 = smov 4  }
  0x13   :  { %36 = dma.hbm_to_vmem [thread:$0]  %s520_s1, 256, %s31_s19, [#allocation7], %s415_s30, %s415_s30, %s416_s6  }
  0x14   :  { %s341_s11 = scalar_lea.hbm %s519_s0, 128 }
  0x15   :  { %p342_p8 = scmp.ne.s32.totalorder %s519_s0, %s341_s11  ;;  %p345_p9 = scmp.lt.u32.totalorder %s341_s11, %s519_s0 }
  0x17   :  { %p347_p10 = pnand %p345_p9, %p342_p8 }
  0x19   :  { %350 = shalt.err (!%p347_p10)
}
  0x1a   :  { %s351_s16 = scalar_lea.vmem %s456_s21, 128  ;;  %p356_p12 = scmp.lt.s32.totalorder %s456_s21, %s456_s21 }
  0x1b   :  { %p352_p11 = scmp.ne.s32.totalorder %s456_s21, %s351_s16  ;;  %p357_p13 = scmp.lt.s32.totalorder %s351_s16, %s351_s16 }
  0x1d   :  { %p358_p0 = por %p357_p13, %p356_p12 }
  0x1f   :  { %p359_p1 = pnand %p358_p0, %p352_p11 }
  0x21   :  { %362 = shalt.err (!%p359_p1)
}
  0x22   :  { %24 = dma.hbm_to_vmem [thread:$0]  %s519_s0, 128, %s456_s21, [#allocation4], %s415_s30, %s415_s30, %s416_s6  }
  0x23   :  { %s417_s18 = smov [#allocation8]   ;;  %s363_s23 = scalar_lea.hbm %s522_s3, 512 }
  0x24   :  { %s44_s19 = sshll.u32 %s417_s18, 4  ;;  %p364_p2 = scmp.ne.s32.totalorder %s522_s3, %s363_s23  ;;  %s45_s19 = int_to_ptr.vmem [resolvable:$true] %s44_s19 }
  0x25   :  { %p367_p3 = scmp.lt.u32.totalorder %s363_s23, %s522_s3 }
  0x27   :  { %p369_p4 = pnand %p367_p3, %p364_p2 }
  0x29   :  { %372 = shalt.err (!%p369_p4)
}
  0x2a   :  { %s373_s28 = scalar_lea.vmem %s45_s19, 512  ;;  %p378_p6 = scmp.lt.s32.totalorder %s45_s19, %s45_s19 }
  0x2b   :  { %p374_p5 = scmp.ne.s32.totalorder %s45_s19, %s373_s28  ;;  %p379_p7 = scmp.lt.s32.totalorder %s373_s28, %s373_s28 }
  0x2d   :  { %p380_p8 = por %p379_p7, %p378_p6 }
  0x2f   :  { %p381_p9 = pnand %p380_p8, %p374_p5 }
  0x31   :  { %384 = shalt.err (!%p381_p9)
}
  0x32   :  { %s418_s0 = smov 128   ;;  %s419_s21 = smov 8  }
  0x33   :  { %50 = dma.hbm_to_vmem [thread:$0]  %s522_s3, 512, %s45_s19, [#allocation7], %s418_s0, %s418_s0, %s419_s21  }
  0x34   :  { %407 = dma.done.wait [#allocation4], 128  }
  0x35   :  { %408 = vsyncadd [#allocation4], 4294967168 }
  0x36   :  { %409 = dma.done.wait [#allocation7], 768  }
  0x37   :  { %410 = vsyncadd [#allocation7], 4294966528  ;;  %v420_v0 = vmov 0.0   ;;  %vm421_vm0 = vmmov 0   ;;  %v310_v1 = vld [vmem:[#allocation6] sm:$0xff]   ;;  %v311_v2 = vld [vmem:[#allocation6 + $0x8] sm:$0xff]   ;;  %v240_v19 = vlaneseq }
  0x38   :  { %289 = vmatprep.subr.bf16.mxu0 %v420_v0  ;;  %293 = vmatprep.mubr.msk.bf16.mxu0 %vm421_vm0, %v420_v0  ;;  %v312_v3 = vld [vmem:[#allocation3] sm:$0xff]   ;;  %vm101_vm1 = vcmask 261120   ;;  %v316_v6 = vld [vmem:[#allocation8 + $0x14] ss:$8 sps:$4 sm:$0xff]   ;;  %v318_v7 = vld [vmem:[#allocation8 + $0x10] ss:$8 sps:$4 sm:$0xff]  }
  0x39   :  { %290 = vmatpush3.bf16.msra.mxu0 %v310_v1  ;;  %v313_v4 = vld [vmem:[#allocation8 + $0x4] ss:$8 sps:$4 sm:$0xff]   ;;  %v315_v5 = vld [vmem:[#allocation8] ss:$8 sps:$4 sm:$0xff]   ;;  %v422_v8 = vmov 0   ;;  %v241_v20 = vshrl.u32 %v240_v19, 7 }
  0x3a   :  { %291 = vmatprep.subr.bf16.mxu0 %v420_v0  ;;  %180 = vmatprep.subr.bf16.mxu1 %v313_v4  ;;  %v276_v9 = vld [vmem:[%s521_s2] ss:$0 sm:$0xff]  ;;  %s423_s2 = smov [#allocation9]  }
  0x3b   :  { %181 = vmatpush1.bf16.msra.mxu1 %v315_v5  ;;  %212 = vmatprep.mubr.bf16.mxu1 %v422_v8  ;;  %v242_v21 = vsub.s32 0, %v241_v20  ;;  %v238_v22 = vld [vmem:[%s523_s4] sm:$0x3]  ;;  %v246_v23 = vsub.s32 1, %v241_v20  ;;  %s263_s9 = sshll.u32 %s423_s2, 4  ;;  %s264_s9 = int_to_ptr.vmem [resolvable:$true] %s263_s9 }
  0x3c   :  { %182 = vmatprep.subr.bf16.mxu1 %v316_v6  ;;  %s385_s10 = scalar_lea.vmem %s264_s9, 512  ;;  %p390_p11 = scmp.lt.s32.totalorder %s264_s9, %s264_s9 }
  0x3d   :  { %292 = vmatpush3.bf16.msra.mxu0 %v311_v2  ;;  %v243_v24 = vrot.slane %v238_v22, %v242_v21  ;;  %v247_v25 = vrot.slane %v238_v22, %v246_v23  ;;  %p386_p10 = scmp.ne.s32.totalorder %s264_s9, %s385_s10  ;;  %p391_p12 = scmp.lt.s32.totalorder %s385_s10, %s385_s10 }
  0x3f   :  { %183 = vmatpush1.bf16.msra.mxu1 %v318_v7  ;;  %p392_p13 = por %p391_p12, %p390_p11 }
  0x40   :  { %294 = vmatmul.mubr.msk.bf16.vlgmr.msra.gmra.mrb[0].mxu0 %vm101_vm1, %v312_v3 }
  0x41   :  { %p393_p0 = pnand %p392_p13, %p386_p10 }
 0x113   :  { %v139_v10 = vpop.f32.mrb[0].mxu0 }
 0x114   :  { %v140_v11 = vadd.f32 %v276_v9, %v139_v10  ;;  %v295_v12 = vpop.f32.mrb[1].mxu0 }
 0x115   :  { %v142_v13 = vpop.f32.mrb[2].mxu0 }
 0x116   :  { %v143_v14 = vadd.f32 %v276_v9, %v142_v13  ;;  %v296_v15 = vpop.f32.mrb[3].mxu0  ;;  %v146_v16 = vmax.f32 %v140_v11, 0.0 }
 0x118   :  { %v147_v17 = vmax.f32 %v143_v14, 0.0 }
 0x11a   :  { %v152_v18 = vpack.c.bf16 %v147_v17, %v146_v16 }
 0x11c   :  { %285 = vmatmul.mubr.msk.bf16.vlgmr.msra.gmra.mrb[0].mxu1 %vm101_vm1, %v152_v18 }
 0x1ef   :  { %v214_v26 = vpop.f32.mrb[0].mxu1 }
 0x1f0   :  { %v250_v27 = vadd.f32 %v243_v24, %v214_v26  ;;  %v216_v28 = vpop.f32.mrb[1].mxu1 }
 0x1f1   :  { %v251_v29 = vadd.f32 %v247_v25, %v216_v28  ;;  %v218_v30 = vpop.f32.mrb[2].mxu1 }
 0x1f2   :  { %254 = vst [vmem:[#allocation9] sm:$0xff] %v250_v27  ;;  %v252_v31 = vadd.f32 %v243_v24, %v218_v30  ;;  %v220_v32 = vpop.f32.mrb[3].mxu1 }
 0x1f3   :  { %255 = vst [vmem:[#allocation9 + $0x8] sm:$0xff] %v251_v29  ;;  %v253_v33 = vadd.f32 %v247_v25, %v220_v32 }
 0x1f4   :  { %256 = vst [vmem:[#allocation9 + $0x10] sm:$0xff] %v252_v31 }
 0x1f5   :  { %257 = vst [vmem:[#allocation9 + $0x18] sm:$0xff] %v253_v33 }
 0x1f6   :  { %396 = shalt.err (!%p393_p0)
}
 0x1f7   :  { %s397_s12 = scalar_lea.hbm %s524_s5, 512 }
 0x1f8   :  { %p398_p1 = scmp.ne.s32.totalorder %s524_s5, %s397_s12  ;;  %p401_p2 = scmp.lt.u32.totalorder %s397_s12, %s524_s5 }
 0x1fa   :  { %p403_p3 = pnand %p401_p2, %p398_p1 }
 0x1fc   :  { %406 = shalt.err (!%p403_p3)
}
 0x1fd   :  { %s424_s1 = smov 256   ;;  %s425_s17 = smov 16  }
 0x1fe   :  { %269 = dma.vmem_to_hbm [thread:$0]  %s264_s9, 512, %s524_s5, [#allocation5], %s424_s1, %s424_s1, %s425_s17  }
 0x1ff   :  { %411 = dma.done.wait [#allocation5], 512  }
 0x200   :  { %412 = vsyncadd [#allocation5], 4294966784 }
 0x201   :  { %273 = vsyncpa [#allocation4], 1 }
 0x202   :  { %274 = vsyncpa [#allocation7], 1 }
 0x203   :  { %275 = vsyncpa [#allocation5], 1 }

</bundles_post_ra>
